<compile_context>
chip_gen: v5e
topology: v5e:2x2
jax: 0.10.0
libtpu: 0.0.40
codegen_flags: <defaults>
</compile_context>

<pallas_src>
import functools

import jax
import jax.numpy as jnp
from jax.experimental import pallas as pl
from jax.experimental.pallas import tpu as pltpu


# ----------------------------------------------------------------------------
# VMEM budgeting (generation-aware)
# ----------------------------------------------------------------------------
def _vmem_limit_bytes():
    cap = 64 << 20  # conservative fallback: smallest physical VMEM (v7x per-TC)
    try:
        info = pltpu.get_tpu_info()
        cap = int(getattr(info, "vmem_capacity_bytes", cap)) or cap
    except Exception:
        pass
    # leave headroom for Mosaic-internal scratch / semaphores
    return min(int(cap * 0.7), 100 << 20)


def _step_bytes(C, ts, itemsize):
    # double-buffered input + output blocks, plus ~3 tile-sized f32 temporaries
    return 4 * C * ts * itemsize + 3 * C * ts * 4


def _pick_spatial_tile(S, C, itemsize, budget):
    """Largest spatial (lane) tile that divides S, is a multiple of 128, and
    fits the budget.  Falls back to the full extent when S is not a multiple
    of 128 (only layout-legal choice)."""
    if S % 128 != 0:
        # TODO(synk): pad/mask the spatial axis for very large non-128-multiple
        # S; real SE-block shapes either divide by 128 or fit the fused path.
        return S
    divs = [t for t in range(128, S + 1, 128) if S % t == 0]
    fitting = [t for t in divs if _step_bytes(C, t, itemsize) <= budget]
    return max(fitting) if fitting else min(divs)


# ----------------------------------------------------------------------------
# Kernel A (fast path): fully fused per-image SCSE.  Block = (1, C, S).
#   x read once, out written once.  All small ops stay in-kernel.
# ----------------------------------------------------------------------------
def _fused_kernel(x_ref, w1_ref, b1_ref, w2_ref, b2_ref, ws_ref, bs_ref,
                  o_ref, *, inv_s):
    x = x_ref[0]                                    # (C, S) native dtype
    xf = x.astype(jnp.float32)

    # --- cSE: global average pool + bottleneck MLP (all f32) ---------------
    mean = jnp.sum(xf, axis=-1, keepdims=True) * inv_s              # (C, 1)
    h = jnp.tanh(jnp.sum(w1_ref[...] * mean, axis=0, keepdims=True)
                 + b1_ref[...])                                     # (1, Cmid)
    z = jnp.sum(w2_ref[...] * h, axis=-1, keepdims=True) + b2_ref[...]  # (C, 1)
    cse = jax.nn.sigmoid(z)                                         # (C, 1)

    # --- sSE: per-pixel 1x1 conv (channel reduce) + sigmoid ----------------
    sse = jax.nn.sigmoid(
        jnp.sum(xf * ws_ref[...], axis=0, keepdims=True) + bs_ref[...])  # (1, S)

    # --- recalibration: x * (cSE + sSE), multiply in native dtype ----------
    scale = (cse + sse).astype(x.dtype)                             # (C, S)
    o_ref[0] = x * scale


# ----------------------------------------------------------------------------
# Kernel B1 (fallback pass 1): tiled spatial-sum accumulator + cSE MLP.
# ----------------------------------------------------------------------------
def _pool_cse_kernel(x_ref, w1_ref, b1_ref, w2_ref, b2_ref, cse_ref, acc_ref,
                     *, inv_s):
    s = pl.program_id(1)

    @pl.when(s == 0)
    def _():
        acc_ref[...] = jnp.zeros_like(acc_ref)

    acc_ref[...] += jnp.sum(x_ref[0].astype(jnp.float32),
                            axis=-1, keepdims=True)                 # (C, 1)

    @pl.when(s == pl.num_programs(1) - 1)
    def _():
        mean = acc_ref[...] * inv_s                                  # (C, 1)
        h = jnp.tanh(jnp.sum(w1_ref[...] * mean, axis=0, keepdims=True)
                     + b1_ref[...])                                  # (1, Cmid)
        z = jnp.sum(w2_ref[...] * h, axis=-1, keepdims=True) + b2_ref[...]
        cse_ref[0] = jax.nn.sigmoid(z).astype(cse_ref.dtype)        # (C, 1)


# ----------------------------------------------------------------------------
# Kernel B2 (fallback pass 2): fused sSE + x*(cSE + sSE), single read/write.
# ----------------------------------------------------------------------------
def _apply_kernel(x_ref, cse_ref, ws_ref, bs_ref, o_ref):
    x = x_ref[0]                                                     # (C, ts)
    xf = x.astype(jnp.float32)
    sse = jax.nn.sigmoid(
        jnp.sum(xf * ws_ref[...], axis=0, keepdims=True) + bs_ref[...])  # (1, ts)
    scale = (cse_ref[0] + sse).astype(x.dtype)                       # (C, ts)
    o_ref[0] = x * scale


# ----------------------------------------------------------------------------
# Wrapper
# ----------------------------------------------------------------------------
def scse_forward(x_nchw, p):
    """x_nchw: (N, C, H, W).  Returns (N, C, H, W)."""
    N, C, H, W = x_nchw.shape
    S = H * W
    Cmid = p["cse_w1"].shape[1]
    x = x_nchw.reshape(N, C, S)          # free metadata reshape, no transpose
    itemsize = x.dtype.itemsize

    limit = _vmem_limit_bytes()
    budget = int(limit * 0.85)

    w_specs = [
        pl.BlockSpec((C, Cmid), lambda *a: (0, 0)),   # w1  (C, Cmid)
        pl.BlockSpec((1, Cmid), lambda *a: (0, 0)),   # b1  (1, Cmid)
        pl.BlockSpec((C, Cmid), lambda *a: (0, 0)),   # w2  (C, Cmid)
        pl.BlockSpec((C, 1), lambda *a: (0, 0)),      # b2  (C, 1)
    ]
    s_specs = [
        pl.BlockSpec((C, 1), lambda *a: (0, 0)),      # sse_w (C, 1)
        pl.BlockSpec((1, 1), lambda *a: (0, 0)),      # sse_b (1, 1)
    ]

    # ---- single-pass fast path: whole per-image slab resident in VMEM ------
    if _step_bytes(C, S, itemsize) <= budget:
        out = pl.pallas_call(
            functools.partial(_fused_kernel, inv_s=1.0 / float(S)),
            out_shape=jax.ShapeDtypeStruct((N, C, S), x.dtype),
            grid=(N,),
            in_specs=[pl.BlockSpec((1, C, S), lambda n: (n, 0, 0))]
            + w_specs + s_specs,
            out_specs=pl.BlockSpec((1, C, S), lambda n: (n, 0, 0)),
            compiler_params=pltpu.CompilerParams(
                dimension_semantics=("parallel",), vmem_limit_bytes=limit),
        )(x, p["cse_w1"], p["cse_b1"], p["cse_w2"], p["cse_b2"],
          p["sse_w"], p["sse_b"])
        return out.reshape(N, C, H, W)

    # ---- two-pass fallback for slabs too large for VMEM --------------------
    ts = _pick_spatial_tile(S, C, itemsize, budget)
    grid = (N, S // ts)

    cse = pl.pallas_call(
        functools.partial(_pool_cse_kernel, inv_s=1.0 / float(S)),
        out_shape=jax.ShapeDtypeStruct((N, C, 1), jnp.float32),
        grid=grid,
        in_specs=[pl.BlockSpec((1, C, ts), lambda n, s: (n, 0, s))] + w_specs,
        out_specs=pl.BlockSpec((1, C, 1), lambda n, s: (n, 0, 0)),
        scratch_shapes=[pltpu.VMEM((C, 1), jnp.float32)],
        compiler_params=pltpu.CompilerParams(
            dimension_semantics=("parallel", "arbitrary"),
            vmem_limit_bytes=limit),
    )(x, p["cse_w1"], p["cse_b1"], p["cse_w2"], p["cse_b2"])

    out = pl.pallas_call(
        _apply_kernel,
        out_shape=jax.ShapeDtypeStruct((N, C, S), x.dtype),
        grid=grid,
        in_specs=[
            pl.BlockSpec((1, C, ts), lambda n, s: (n, 0, s)),
            pl.BlockSpec((1, C, 1), lambda n, s: (n, 0, 0)),
        ] + s_specs,
        out_specs=pl.BlockSpec((1, C, ts), lambda n, s: (n, 0, s)),
        compiler_params=pltpu.CompilerParams(
            dimension_semantics=("parallel", "parallel"),
            vmem_limit_bytes=limit),
    )(x, cse, p["sse_w"], p["sse_b"])
    return out.reshape(N, C, H, W)


# ----------------------------------------------------------------------------
# Deterministic parameters (PyTorch Conv2d 1x1 shapes) + conversion
# ----------------------------------------------------------------------------
def init_scse_params(key, in_channels, reduction=16):
    cmid = in_channels // reduction
    assert cmid >= 1, "in_channels must be >= reduction"
    ks = jax.random.split(key, 6)
    raw = dict(  # raw PyTorch-layout weights: Conv2d(out, in, 1, 1) + bias
        cse_conv1_w=jax.random.normal(ks[0], (cmid, in_channels, 1, 1),
                                      jnp.float32) / jnp.sqrt(float(in_channels)),
        cse_conv1_b=jax.random.normal(ks[1], (cmid,), jnp.float32) * 0.1,
        cse_conv2_w=jax.random.normal(ks[2], (in_channels, cmid, 1, 1),
                                      jnp.float32) / jnp.sqrt(float(cmid)),
        cse_conv2_b=jax.random.normal(ks[3], (in_channels,), jnp.float32) * 0.1,
        sse_conv_w=jax.random.normal(ks[4], (1, in_channels, 1, 1),
                                     jnp.float32) / jnp.sqrt(float(in_channels)),
        sse_conv_b=jax.random.normal(ks[5], (1,), jnp.float32) * 0.1,
    )
    pallas_p = dict(  # kernel-friendly (NCHW-native) layouts
        cse_w1=raw["cse_conv1_w"][:, :, 0, 0].T,            # (C, Cmid)
        cse_b1=raw["cse_conv1_b"].reshape(1, cmid),          # (1, Cmid)
        cse_w2=raw["cse_conv2_w"][:, :, 0, 0],               # (C, Cmid)
        cse_b2=raw["cse_conv2_b"].reshape(in_channels, 1),   # (C, 1)
        sse_w=raw["sse_conv_w"][0, :, 0, 0].reshape(in_channels, 1),  # (C, 1)
        sse_b=raw["sse_conv_b"].reshape(1, 1),               # (1, 1)
    )
    return raw, pallas_p


# ----------------------------------------------------------------------------
# Pure-JAX NCHW reference (mirrors the PyTorch forward) for validation
# ----------------------------------------------------------------------------
def scse_ref(x, raw):
    pooled = jnp.mean(x, axis=(2, 3))                                  # (N, C)
    h = jnp.tanh(pooled @ raw["cse_conv1_w"][:, :, 0, 0].T + raw["cse_conv1_b"])
    cse = jax.nn.sigmoid(h @ raw["cse_conv2_w"][:, :, 0, 0].T + raw["cse_conv2_b"])
    sse_logit = jnp.einsum("nchw,c->nhw", x, raw["sse_conv_w"][0, :, 0, 0]) \
        + raw["sse_conv_b"][0]
    sse = jax.nn.sigmoid(sse_logit)[:, None, :, :]                     # (N,1,H,W)
    return x * cse[:, :, None, None] + x * sse


# ----------------------------------------------------------------------------
if __name__ == "__main__":
    key = jax.random.PRNGKey(0)
    kx, kp = jax.random.split(key)

    # in_channels=64, reduction=16 -> bottleneck width 4
    N, C, H, W = 2, 64, 16, 16
    x = jax.random.normal(kx, (N, C, H, W), jnp.float32)
    raw, params = init_scse_params(kp, C, reduction=16)

    out = jax.block_until_ready(scse_forward(x, params))

    ref = scse_ref(x, raw)
    assert out.shape == ref.shape, (out.shape, ref.shape)
    err = float(jnp.max(jnp.abs(out - ref)))
    assert err < 1e-3, f"max abs err {err}"

    print("KERNEL_OK")
</pallas_src>

<mosaic_0001>
module attributes {stable_mosaic.version = 11 : i64} {
  func.func @_fused_kernel(%arg0: i32, %arg1: memref<1x64x256xf32, #tpu.memory_space<vmem>>, %arg2: memref<64x4xf32, #tpu.memory_space<vmem>>, %arg3: memref<1x4xf32, #tpu.memory_space<vmem>>, %arg4: memref<64x4xf32, #tpu.memory_space<vmem>>, %arg5: memref<64x1xf32, #tpu.memory_space<vmem>>, %arg6: memref<64x1xf32, #tpu.memory_space<vmem>>, %arg7: memref<1x1xf32, #tpu.memory_space<vmem>>, %arg8: memref<1x64x256xf32, #tpu.memory_space<vmem>>) attributes {dimension_semantics = [#tpu.dimension_semantics<parallel>], iteration_bounds = array<i64: 2>, scalar_prefetch = 0 : i64, scratch_operands = 0 : i64, tpu.core_type = #tpu.core_type<tc>, window_params = [{transform_indices = @transform_0, window_bounds = array<i64: 1, 64, 256>}, {pipeline_mode = #tpu.pipeline_mode<synchronous>, transform_indices = @transform_1, window_bounds = array<i64: 64, 4>}, {pipeline_mode = #tpu.pipeline_mode<synchronous>, transform_indices = @transform_2, window_bounds = array<i64: 1, 4>}, {pipeline_mode = #tpu.pipeline_mode<synchronous>, transform_indices = @transform_3, window_bounds = array<i64: 64, 4>}, {pipeline_mode = #tpu.pipeline_mode<synchronous>, transform_indices = @transform_4, window_bounds = array<i64: 64, 1>}, {pipeline_mode = #tpu.pipeline_mode<synchronous>, transform_indices = @transform_5, window_bounds = array<i64: 64, 1>}, {pipeline_mode = #tpu.pipeline_mode<synchronous>, transform_indices = @transform_6, window_bounds = array<i64: 1, 1>}, {transform_indices = @transform_7, window_bounds = array<i64: 1, 64, 256>}]} {
    %c0 = arith.constant 0 : index
    %c0_0 = arith.constant 0 : index
    %c0_1 = arith.constant 0 : index
    %0 = vector.load %arg1[%c0, %c0_0, %c0_1] : memref<1x64x256xf32, #tpu.memory_space<vmem>>, vector<1x64x256xf32>
    %1 = vector.shape_cast %0 : vector<1x64x256xf32> to vector<64x256xf32>
    %cst = arith.constant dense<0.000000e+00> : vector<64xf32>
    %2 = vector.multi_reduction <add>, %1, %cst [1] : vector<64x256xf32> to vector<64xf32>
    %3 = vector.shape_cast %2 : vector<64xf32> to vector<64x1xf32>
    %cst_2 = arith.constant 3.906250e-03 : f32
    %4 = vector.broadcast %cst_2 : f32 to vector<64x1xf32>
    %5 = arith.mulf %3, %4 : vector<64x1xf32>
    %c0_3 = arith.constant 0 : index
    %c0_4 = arith.constant 0 : index
    %6 = vector.load %arg2[%c0_3, %c0_4] : memref<64x4xf32, #tpu.memory_space<vmem>>, vector<64x4xf32>
    %7 = vector.broadcast %5 : vector<64x1xf32> to vector<64x4xf32>
    %8 = arith.mulf %6, %7 : vector<64x4xf32>
    %cst_5 = arith.constant dense<0.000000e+00> : vector<4xf32>
    %9 = vector.multi_reduction <add>, %8, %cst_5 [0] : vector<64x4xf32> to vector<4xf32>
    %10 = vector.shape_cast %9 : vector<4xf32> to vector<1x4xf32>
    %c0_6 = arith.constant 0 : index
    %c0_7 = arith.constant 0 : index
    %11 = vector.load %arg3[%c0_6, %c0_7] : memref<1x4xf32, #tpu.memory_space<vmem>>, vector<1x4xf32>
    %12 = arith.addf %10, %11 : vector<1x4xf32>
    %13 = math.tanh %12 : vector<1x4xf32>
    %c0_8 = arith.constant 0 : index
    %c0_9 = arith.constant 0 : index
    %14 = vector.load %arg4[%c0_8, %c0_9] : memref<64x4xf32, #tpu.memory_space<vmem>>, vector<64x4xf32>
    %15 = vector.broadcast %13 : vector<1x4xf32> to vector<64x4xf32>
    %16 = arith.mulf %14, %15 : vector<64x4xf32>
    %cst_10 = arith.constant dense<0.000000e+00> : vector<64xf32>
    %17 = vector.multi_reduction <add>, %16, %cst_10 [1] : vector<64x4xf32> to vector<64xf32>
    %18 = vector.shape_cast %17 : vector<64xf32> to vector<64x1xf32>
    %c0_11 = arith.constant 0 : index
    %c0_12 = arith.constant 0 : index
    %19 = vector.load %arg5[%c0_11, %c0_12] : memref<64x1xf32, #tpu.memory_space<vmem>>, vector<64x1xf32>
    %20 = arith.addf %18, %19 : vector<64x1xf32>
    %21 = arith.negf %20 : vector<64x1xf32>
    %22 = math.exp %21 : vector<64x1xf32>
    %cst_13 = arith.constant 1.000000e+00 : f32
    %23 = vector.broadcast %cst_13 : f32 to vector<64x1xf32>
    %24 = arith.addf %23, %22 : vector<64x1xf32>
    %25 = arith.divf %23, %24 : vector<64x1xf32>
    %c0_14 = arith.constant 0 : index
    %c0_15 = arith.constant 0 : index
    %26 = vector.load %arg6[%c0_14, %c0_15] : memref<64x1xf32, #tpu.memory_space<vmem>>, vector<64x1xf32>
    %27 = vector.broadcast %26 : vector<64x1xf32> to vector<64x256xf32>
    %28 = arith.mulf %1, %27 : vector<64x256xf32>
    %cst_16 = arith.constant dense<0.000000e+00> : vector<256xf32>
    %29 = vector.multi_reduction <add>, %28, %cst_16 [0] : vector<64x256xf32> to vector<256xf32>
    %30 = vector.shape_cast %29 : vector<256xf32> to vector<1x256xf32>
    %c0_17 = arith.constant 0 : index
    %c0_18 = arith.constant 0 : index
    %31 = vector.load %arg7[%c0_17, %c0_18] : memref<1x1xf32, #tpu.memory_space<vmem>>, vector<1x1xf32>
    %32 = vector.broadcast %31 : vector<1x1xf32> to vector<1x256xf32>
    %33 = arith.addf %30, %32 : vector<1x256xf32>
    %34 = arith.negf %33 : vector<1x256xf32>
    %35 = math.exp %34 : vector<1x256xf32>
    %cst_19 = arith.constant 1.000000e+00 : f32
    %36 = vector.broadcast %cst_19 : f32 to vector<1x256xf32>
    %37 = arith.addf %36, %35 : vector<1x256xf32>
    %38 = arith.divf %36, %37 : vector<1x256xf32>
    %39 = vector.broadcast %25 : vector<64x1xf32> to vector<64x256xf32>
    %40 = vector.broadcast %38 : vector<1x256xf32> to vector<64x256xf32>
    %41 = arith.addf %39, %40 : vector<64x256xf32>
    %42 = arith.mulf %1, %41 : vector<64x256xf32>
    %c0_20 = arith.constant 0 : index
    %c0_21 = arith.constant 0 : index
    %c0_22 = arith.constant 0 : index
    %43 = vector.load %arg8[%c0_20, %c0_21, %c0_22] : memref<1x64x256xf32, #tpu.memory_space<vmem>>, vector<1x64x256xf32>
    %44 = vector.shape_cast %43 : vector<1x64x256xf32> to vector<64x256xf32>
    %45 = vector.shape_cast %42 : vector<64x256xf32> to vector<1x64x256xf32>
    tpu.vector_store %arg8[%c0_20, %c0_21, %c0_22], %45 {strides = array<i32>} : memref<1x64x256xf32, #tpu.memory_space<vmem>>, vector<1x64x256xf32>,
    return
  }
  func.func @transform_0(%arg0: i32) -> (i32, i32, i32) {
    %c0_i32 = arith.constant 0 : i32
    %c0_i32_0 = arith.constant 0 : i32
    %c0_i32_1 = arith.constant 0 : i32
    return %arg0, %c0_i32, %c0_i32_0 : i32, i32, i32
  }
  func.func @transform_1(%arg0: i32) -> (i32, i32) {
    %c0_i32 = arith.constant 0 : i32
    %c0_i32_0 = arith.constant 0 : i32
    %c0_i32_1 = arith.constant 0 : i32
    return %c0_i32, %c0_i32_0 : i32, i32
  }
  func.func @transform_2(%arg0: i32) -> (i32, i32) {
    %c0_i32 = arith.constant 0 : i32
    %c0_i32_0 = arith.constant 0 : i32
    %c0_i32_1 = arith.constant 0 : i32
    return %c0_i32, %c0_i32_0 : i32, i32
  }
  func.func @transform_3(%arg0: i32) -> (i32, i32) {
    %c0_i32 = arith.constant 0 : i32
    %c0_i32_0 = arith.constant 0 : i32
    %c0_i32_1 = arith.constant 0 : i32
    return %c0_i32, %c0_i32_0 : i32, i32
  }
  func.func @transform_4(%arg0: i32) -> (i32, i32) {
    %c0_i32 = arith.constant 0 : i32
    %c0_i32_0 = arith.constant 0 : i32
    %c0_i32_1 = arith.constant 0 : i32
    return %c0_i32, %c0_i32_0 : i32, i32
  }
  func.func @transform_5(%arg0: i32) -> (i32, i32) {
    %c0_i32 = arith.constant 0 : i32
    %c0_i32_0 = arith.constant 0 : i32
    %c0_i32_1 = arith.constant 0 : i32
    return %c0_i32, %c0_i32_0 : i32, i32
  }
  func.func @transform_6(%arg0: i32) -> (i32, i32) {
    %c0_i32 = arith.constant 0 : i32
    %c0_i32_0 = arith.constant 0 : i32
    %c0_i32_1 = arith.constant 0 : i32
    return %c0_i32, %c0_i32_0 : i32, i32
  }
  func.func @transform_7(%arg0: i32) -> (i32, i32, i32) {
    %c0_i32 = arith.constant 0 : i32
    %c0_i32_0 = arith.constant 0 : i32
    %c0_i32_1 = arith.constant 0 : i32
    return %arg0, %c0_i32, %c0_i32_0 : i32, i32, i32
  }
}

</mosaic_0001>

<bundles_post_ra>
// kernel: tpu_custom_call.1
= control target key start
LH: loop header
LB: loop body
LE: loop exit
PB: predicated region body
PF: predicated region fallthrough
CT: control target
= control target key end

     0   :  { %s1664_s0 = inlined_call_operand.hbm [shape: f32[2,64,256], index: 0, kind: input, shape index: {}]   ;;  %s1665_s1 = inlined_call_operand.vmem [shape: f32[64,4], index: 1, kind: input, shape index: {}]   ;;  %s1666_s2 = inlined_call_operand.vmem [shape: f32[1,4], index: 2, kind: input, shape index: {}]   ;;  %s1667_s3 = inlined_call_operand.vmem [shape: f32[64,4], index: 3, kind: input, shape index: {}]   ;;  %s1668_s4 = inlined_call_operand.vmem [shape: f32[64,1], index: 4, kind: input, shape index: {}]   ;;  %s1669_s5 = inlined_call_operand.vmem [shape: f32[64,1], index: 5, kind: input, shape index: {}]   ;;  %s1670_s6 = inlined_call_operand.<no memory space> [shape: f32[1,1], index: 6, kind: input, shape index: {}]   ;;  %s1671_s7 = inlined_call_operand.hbm [shape: f32[2,64,256], index: 7, kind: output, shape index: {}]  }
   0x1   :  { %v12_v0 = vstv %s1670_s6 }
   0x2   :  { %13 = vst [vmem:[#allocation2] sm:$0x1] %v12_v0 }
   0x3   :  { %14 = vsyncpa [#allocation4], 0 }
   0x4   :  { %16 = vsyncpa [#allocation4 + $0x1], 0 }
   0x5   :  { %17 = vsyncpa [#allocation5], 0 }
   0x6   :  { %19 = vsyncpa [#allocation5 + $0x1], 0  ;;  %s1181_s26 = smov 0   ;;  %s1183_s27 = smov 0  }
   0x7   :  { %s1185_s28 = smov 0   ;;  %s1187_s29 = smov 0  }
   0x8 LB: > { %s1202_s6 = sadd.s32 4294967295, %s1131_s29   ;;  %s913_s30 = sadd.s32 4294967294, %s1131_s29   ;;  %s1131_s29 = sphi %s1187_s29, %s1689_s29   ;;  %s1127_s28 = sphi %s1185_s28, %s1688_s28   ;;  %s1123_s27 = sphi %s1183_s27, %s1687_s27   ;;  %s1119_s26 = sphi %s1181_s26, %s1686_s26  }
   0x9   : > { %s1206_s8 = sadd.s32 1, %s1131_s29   ;;  %s32_s9 = sadd.s32 1, %s1127_s28 }
   0xa   : > { %s29_s10 = ssub.s32 %s1131_s29, %s1206_s8  ;;  %p39_p0 = scmp.ne.s32.totalorder %s1127_s28, %s1123_s27 }
   0xb   : > { %p30_p1 = scmp.eq.s32.totalorder %s29_s10, 0  ;;  %p40_p2 = scmp.eq.s32.totalorder %s1131_s29, 0 }
   0xc   : > { %p45_p3 = scmp.ne.s32.totalorder %s1123_s27, %s1119_s26  ;;  %p46_p4 = scmp.eq.s32.totalorder %s1202_s6, 0 }
   0xd   : > { %s1218_s11 = scalar_select %p30_p1, %s1127_s28, %s32_s9  }
   0xe   : > { %p1220_p5 = por %p40_p2, %p39_p0  ;;  %p1224_p6 = por %p46_p4, %p45_p3 }
   0xf   : > { %p195_p7 = scmp.eq.s32.totalorder %s1202_s6, 1  ;;  %p201_p8 = scmp.eq.s32.totalorder %s913_s30, 1 }
  0x10   : > { %p951_p10 = scmp.lt.s32.totalorder %s1131_s29, 2  ;;  %s239_s16 = sand.u32 1, %s1127_s28  }
  0x11   : > { %p1231_p11 = por %p195_p7, %p39_p0  ;;  %p1235_p12 = por %p201_p8, %p45_p3 }
  0x12   : > { %s937_s17 = sshll.u32 %s1131_s29, 7  ;;  %s916_s18 = sshll.u32 %s239_s16, 7 }
  0x13   : > { %s248_s21 = scalar_lea.hbm %s1664_s0, %s937_s17  ;;  %s243_s23 = scalar_lea.vmem [#allocation3], %s916_s18 }
  0x14   : > { %s249_s22 = sshll.u32 %s248_s21, 4  ;;  %s251_s24 = sshll.u32 %s243_s23, 4  ;;  %s250_s22 = int_to_ptr.hbm [resolvable:$true] %s249_s22  ;;  %s252_s24 = int_to_ptr.vmem [resolvable:$true] %s251_s24 }
  0x15   : > { %p1246_p13 = pnand %p951_p10, %p1220_p5  ;;  %p919_p0 = scmp.ge.s32.totalorder %s1131_s29, 1 }
  0x16   : > { %p259_p1 = scmp.lt.s32.totalorder %s1131_s29, 3  ;;  %s240_s30 = scalar_lea.sflag [#allocation4], %s239_s16 }
  0x17   : > { %s1035_s9 = sshra.s32 %s250_s22, 4  ;;  %p1039_p3 = pneg %p1246_p13  ;;  %s1036_s9 = int_to_ptr.hbm [resolvable:$true] %s1035_s9 }
  0x18   : > { %s1037_s10 = scalar_lea.hbm %s1036_s9, 128  ;;  %s1042_s12 = scalar_lea.hbm %s1664_s0, 256 }
  0x19   : > { %p1038_p2 = scmp.ne.s32.totalorder %s1036_s9, %s1037_s10  ;;  %p1043_p5 = scmp.lt.s32.totalorder %s1036_s9, %s1664_s0 }
  0x1a   : > { %p1044_p8 = scmp.lt.s32.totalorder %s1042_s12, %s1037_s10 }
  0x1b   : > { %p1040_p4 = pnand %p1039_p3, %p1038_p2 }
  0x1c   : > { %p1045_p10 = por %p1044_p8, %p1043_p5 }
  0x1d   : > { %p1041_p7 = pneg %p1040_p4 }
  0x1f   : > { %p1046_p9 = pnand %p1045_p10, %p1041_p7 }
  0x21   : > { %1049 = shalt.err (!%p1046_p9)
}
  0x22   : > { %s1133_s16 = smov 256   ;;  %s1134_s21 = smov 16  }
  0x23   : > { %946 = dma.hbm_to_vmem [thread:$0]  (!%p1246_p13), %s250_s22, 2048, %s252_s24, %s240_s30, %s1133_s16, %s1133_s16, %s1134_s21  }
  0x24   : > { %p260_p2 = pnand %p919_p0, %p259_p1 }
  0x25   : > { %s1267_s23 = sand.u32 (!%p260_p2), 1, %s1123_s27  }
  0x26   : > { %263 = sbr.rel (%p260_p2) target bundleno = 509 (0x1fd), region = 48  ;;  %s920_s9 = sshll.u32 (!%p260_p2), %s1267_s23, 7 }
  0x27   : > { %s266_s10 = scalar_lea.sflag (!%p260_p2), [#allocation4], %s1267_s23  ;;  %s1273_s17 = scalar_lea.vmem (!%p260_p2), [#allocation3], %s920_s9 }
  0x2b   : > { %1110 = dma.done.wait (%p1224_p6), %s266_s10, 2048  }
  0x2c   : > { %1112 = vsyncadd (%p1224_p6), %s266_s10, 4294965248  ;;  %v1135_v1 = vmov 0   ;;  %v1280_v2 = vld [vmem:[%s1273_s17] sm:$0xff]  ;;  %v1283_v3 = vld [vmem:[%s1273_s17 + $0x8] sm:$0xff]  ;;  %vm365_vm0 = vcmask 31744   ;;  %s1598_s22 = scalar_lea.vmem [#allocation6], %s920_s9 }
  0x2d   : > { %990 = vset.pattern.permute.xlu1 %v1135_v1  ;;  %991 = vset.pattern.permute.xlu2 %v1135_v1  ;;  %v1286_v4 = vld [vmem:[%s1273_s17 + $0x20] sm:$0xff]  ;;  %v317_v5 = vadd.f32 %v1283_v3, %v1280_v2  ;;  %v1291_v6 = vld [vmem:[%s1273_s17 + $0x28] sm:$0xff]  ;;  %v1304_v11 = vld [vmem:[%s1273_s17 + $0x10] sm:$0xff]  ;;  %s938_s9 = sshll.u32 %s1202_s6, 7  ;;  %s837_s18 = sshll.u32 %s1598_s22, 4  ;;  %s838_s18 = int_to_ptr.vmem [resolvable:$true] %s837_s18 }
  0x2e   : > { %992 = vset.pattern.permute.xlu0 %v1135_v1  ;;  %v1294_v7 = vld [vmem:[%s1273_s17 + $0x40] sm:$0xff]  ;;  %v1297_v8 = vld [vmem:[%s1273_s17 + $0x48] sm:$0xff]  ;;  %v323_v9 = vadd.f32 %v1291_v6, %v1286_v4  ;;  %v1307_v12 = vld [vmem:[%s1273_s17 + $0x18] sm:$0xff]  ;;  %s836_s30 = scalar_lea.hbm %s1671_s7, %s938_s9  ;;  %s825_s6 = scalar_lea.sflag [#allocation5], %s1267_s23 }
  0x2f   : > { %v329_v10 = vadd.f32 %v1297_v8, %v1294_v7  ;;  %318 = vadd.xlane.f32.xlu0 %v317_v5  ;;  %v1310_v13 = vld [vmem:[%s1273_s17 + $0x30] sm:$0xff]  ;;  %v1313_v14 = vld [vmem:[%s1273_s17 + $0x38] sm:$0xff]  ;;  %v320_v17 = vadd.f32 %v1307_v12, %v1304_v11  ;;  %v1328_v20 = vld [vmem:[%s1273_s17 + $0x60] sm:$0xff]  ;;  %s839_s12 = sshll.u32 %s836_s30, 4  ;;  %s1085_s10 = scalar_lea.hbm %s1671_s7, 256  ;;  %s840_s12 = int_to_ptr.hbm [resolvable:$true] %s839_s12 }
  0x30   : > { %324 = vadd.xlane.f32.xlu1 %v323_v9  ;;  %v1316_v15 = vld [vmem:[%s1273_s17 + $0x50] sm:$0xff]  ;;  %v1319_v16 = vld [vmem:[%s1273_s17 + $0x58] sm:$0xff]  ;;  %v326_v18 = vadd.f32 %v1313_v14, %v1310_v13  ;;  %v1331_v21 = vld [vmem:[%s1273_s17 + $0x68] sm:$0xff]  ;;  %s1079_s19 = sshra.s32 %s840_s12, 4  ;;  %s1080_s19 = int_to_ptr.hbm [resolvable:$true] %s1079_s19 }
  0x31   : > { %330 = vadd.xlane.f32.xlu2 %v329_v10  ;;  %v332_v19 = vadd.f32 %v1319_v16, %v1316_v15  ;;  %v1334_v22 = vld [vmem:[%s1273_s17 + $0x70] sm:$0xff]  ;;  %v1337_v23 = vld [vmem:[%s1273_s17 + $0x78] sm:$0xff]  ;;  %v335_v24 = vadd.f32 %v1331_v21, %v1328_v20  ;;  %v600_v27 = vld [vmem:[%s1669_s5 + $0x8] sm:$0xff]  ;;  %s1081_s20 = scalar_lea.hbm %s1080_s19, 128  ;;  %p1086_p0 = scmp.lt.s32.totalorder %s1080_s19, %s1671_s7 }
  0x32   : > { %v338_v25 = vadd.f32 %v1337_v23, %v1334_v22  ;;  %v599_v26 = vld [vmem:[%s1669_s5] sm:$0xff]  ;;  %v351_v34 = vld [vmem:[%s1665_s1 + $0x10] sm:$0xff]  ;;  %v350_v35 = vld [vmem:[%s1665_s1 + $0x8] sm:$0xff]  ;;  %p1082_p6 = scmp.ne.s32.totalorder %s1080_s19, %s1081_s20  ;;  %p1087_p1 = scmp.lt.s32.totalorder %s1085_s10, %s1081_s20 }
  0x33   : > { %v349_v32 = vld [vmem:[%s1665_s1] sm:$0xff]  ;;  %v352_v39 = vld [vmem:[%s1665_s1 + $0x18] sm:$0xff]  ;;  %v354_v49 = vld [vmem:[%s1665_s1 + $0x28] sm:$0xff] }
  0x34   : > { %v353_v47 = vld [vmem:[%s1665_s1 + $0x20] sm:$0xff]  ;;  %v355_v58 = vld [vmem:[%s1665_s1 + $0x30] sm:$0xff]  ;;  %v356_v61 = vld [vmem:[%s1665_s1 + $0x38] sm:$0xff]  ;;  %p1083_p9 = pnand %p1082_p6, %p1231_p11  ;;  %p1088_p3 = por %p1087_p1, %p1086_p0 }
  0x36   : > { %p1084_p13 = pneg %p1083_p9 }
  0x37   : > { %321 = vadd.xlane.f32.xlu0 %v320_v17 }
  0x38   : > { %327 = vadd.xlane.f32.xlu1 %v326_v18  ;;  %p1089_p4 = pnand %p1088_p3, %p1084_p13 }
  0x39   : > { %333 = vadd.xlane.f32.xlu2 %v332_v19 }
  0x3f   : > { %336 = vadd.xlane.f32.xlu0 %v335_v24 }
  0x40   : > { %339 = vadd.xlane.f32.xlu1 %v338_v25 }
  0x51   : > { %614 = vperm.xlu2 %991, %v600_v27  }
  0x59   : > { %609 = vperm.xlu1 %990, %v599_v26  }
  0xa2   : > { %v319_v28 = vpop.xlane.xlu0 %318 }
  0xa3   : > { %v325_v29 = vpop.xlane.xlu1 %324  ;;  %v341_v31 = vmul.f32 0.00390625, %v319_v28 }
  0xa4   : > { %v331_v30 = vpop.xlane.xlu2 %330  ;;  %v343_v33 = vmul.f32 0.00390625, %v325_v29 }
  0xa5   : > { %v357_v37 = vmul.f32 %v349_v32, %v341_v31  ;;  %v345_v44 = vmul.f32 0.00390625, %v331_v30  ;;  %v387_v32 = vld [vmem:[%s1666_s2] sm:$0x1] }
  0xa6   : > { %v359_v43 = vmul.f32 %v351_v34, %v343_v33 }
  0xa7   : > { %v366_v50 = vsel %vm365_vm0, %v357_v37, 0.0  ;;  %v361_v54 = vmul.f32 %v353_v47, %v345_v44  ;;  %v391_v37 = vld [vmem:[%s1667_s3 + $0x8] sm:$0xff]  ;;  %v394_v47 = vld [vmem:[%s1667_s3 + $0x20] sm:$0xff] }
  0xa8   : > { %v369_v53 = vsel %vm365_vm0, %v359_v43, 0.0 }
  0xa9   : > { %v373_v1 = vsel %vm365_vm0, %v361_v54, 0.0 }
  0xaa   : > { %v322_v36 = vpop.xlane.xlu0 %321 }
  0xab   : > { %v342_v38 = vmul.f32 0.00390625, %v322_v36  ;;  %v328_v40 = vpop.xlane.xlu1 %327  ;;  %v392_v36 = vld [vmem:[%s1667_s3 + $0x10] sm:$0xff] }
  0xac   : > { %v334_v41 = vpop.xlane.xlu2 %333  ;;  %v344_v42 = vmul.f32 0.00390625, %v328_v40 }
  0xad   : > { %v358_v45 = vmul.f32 %v350_v35, %v342_v38  ;;  %v346_v46 = vmul.f32 0.00390625, %v334_v41  ;;  %v390_v38 = vld [vmem:[%s1667_s3] sm:$0xff] }
  0xae   : > { %v360_v48 = vmul.f32 %v352_v39, %v344_v42 }
  0xaf   : > { %v367_v51 = vsel %vm365_vm0, %v358_v45, 0.0  ;;  %v362_v56 = vmul.f32 %v354_v49, %v346_v46  ;;  %v395_v46 = vld [vmem:[%s1667_s3 + $0x28] sm:$0xff] }
  0xb0   : > { %v368_v52 = vadd.f32 %v367_v51, %v366_v50  ;;  %v371_v55 = vsel %vm365_vm0, %v360_v48, 0.0  ;;  %v393_v48 = vld [vmem:[%s1667_s3 + $0x18] sm:$0xff] }
  0xb1   : > { %v375_v5 = vsel %vm365_vm0, %v362_v56, 0.0  ;;  %v396_v56 = vld [vmem:[%s1667_s3 + $0x30] sm:$0xff] }
  0xb2   : > { %v370_v57 = vadd.f32 %v369_v53, %v368_v52  ;;  %v337_v59 = vpop.xlane.xlu0 %336 }
  0xb3   : > { %v347_v60 = vmul.f32 0.00390625, %v337_v59  ;;  %v340_v62 = vpop.xlane.xlu1 %339 }
  0xb4   : > { %v372_v63 = vadd.f32 %v371_v55, %v370_v57  ;;  %v348_v0 = vmul.f32 0.00390625, %v340_v62  ;;  %v397_v55 = vld [vmem:[%s1667_s3 + $0x38] sm:$0xff]  ;;  %v601_v62 = vld [vmem:[%s1669_s5 + $0x10] sm:$0xff] }
  0xb5   : > { %v363_v9 = vmul.f32 %v355_v58, %v347_v60 }
  0xb6   : > { %v374_v10 = vadd.f32 %v373_v1, %v372_v63  ;;  %v364_v17 = vmul.f32 %v356_v61, %v348_v0  ;;  %v603_v61 = vld [vmem:[%s1669_s5 + $0x20] sm:$0xff]  ;;  %v602_v63 = vld [vmem:[%s1669_s5 + $0x18] sm:$0xff]  ;;  %v605_v0 = vld [vmem:[%s1669_s5 + $0x30] sm:$0xff] }
  0xb7   : > { %v377_v18 = vsel %vm365_vm0, %v363_v9, 0.0  ;;  %v604_v1 = vld [vmem:[%s1669_s5 + $0x28] sm:$0xff]  ;;  %v606_v9 = vld [vmem:[%s1669_s5 + $0x38] sm:$0xff] }
  0xb8   : > { %v376_v19 = vadd.f32 %v375_v5, %v374_v10  ;;  %v379_v24 = vsel %vm365_vm0, %v364_v17, 0.0  ;;  %v689_v5 = vld [vmem:[#allocation2] sm:$0x1]  ;;  %v615_v17 = vpop.permute.xlu2 %614 }
  0xba   : > { %v378_v25 = vadd.f32 %v377_v18, %v376_v19  ;;  %v433_v18 = vld [vmem:[%s1668_s4 + $0x10] sm:$0xff]  ;;  %v432_v19 = vld [vmem:[%s1668_s4 + $0x8] sm:$0xff] }
  0xbc   : > { %v380_v26 = vadd.f32 %v379_v24, %v378_v25  ;;  %v431_v24 = vld [vmem:[%s1668_s4] sm:$0xff] }
  0xbe   : > { %v381_v27 = vrot.slane %v380_v26, 4 }
  0xc0   : > { %v382_v28 = vadd.f32 %v381_v27, %v380_v26 }
  0xc2   : > { %v383_v29 = vrot.slane %v382_v28, 2 }
  0xc4   : > { %v384_v30 = vadd.f32 %v383_v29, %v382_v28 }
  0xc6   : > { %v385_v31 = vrot.slane %v384_v30, 1 }
  0xc8   : > { %v386_v33 = vadd.f32 %v385_v31, %v384_v30 }
  0xca   : > { %v388_v34 = vadd.f32 %v387_v32, %v386_v33 }
  0xcb   : > { %v610_v10 = vpop.permute.xlu1 %609 }
  0xcc   : > { %993 = vtanh.f32 %v388_v34  ;;  %v436_v34 = vld [vmem:[%s1668_s4 + $0x28] sm:$0xff] }
  0xd2   : > { %v994_v35 = vpop.eup %993 }
  0xd3   : > { %v398_v39 = vperm.slane %v994_v35, 0  ;;  %v435_v35 = vld [vmem:[%s1668_s4 + $0x20] sm:$0xff] }
  0xd5   : > { %v401_v40 = vmul.f32 %v398_v39, %v392_v36  ;;  %v400_v41 = vmul.f32 %v398_v39, %v391_v37  ;;  %v399_v42 = vmul.f32 %v398_v39, %v390_v38  ;;  %v404_v49 = vmul.f32 %v398_v39, %v395_v46  ;;  %v434_v36 = vld [vmem:[%s1668_s4 + $0x18] sm:$0xff] }
  0xd6   : > { %v403_v50 = vmul.f32 %v398_v39, %v394_v47  ;;  %v402_v51 = vmul.f32 %v398_v39, %v393_v48  ;;  %v406_v57 = vmul.f32 %v398_v39, %v397_v55  ;;  %v405_v58 = vmul.f32 %v398_v39, %v396_v56 }
  0xd7   : > { %v413_v43 = vsel %vm365_vm0, %v401_v40, 0.0  ;;  %v410_v44 = vsel %vm365_vm0, %v400_v41, 0.0  ;;  %v407_v45 = vsel %vm365_vm0, %v399_v42, 0.0  ;;  %v422_v52 = vsel %vm365_vm0, %v404_v49, 0.0 }
  0xd8   : > { %414 = vadd.xlane.f32.xlu1 %v413_v43  ;;  %411 = vadd.xlane.f32.xlu0 %v410_v44  ;;  %v419_v53 = vsel %vm365_vm0, %v403_v50, 0.0  ;;  %v416_v54 = vsel %vm365_vm0, %v402_v51, 0.0  ;;  %v428_v59 = vsel %vm365_vm0, %v406_v57, 0.0  ;;  %v425_v60 = vsel %vm365_vm0, %v405_v58, 0.0  ;;  %v437_v57 = vld [vmem:[%s1668_s4 + $0x30] sm:$0xff] }
  0xd9   : > { %408 = vadd.xlane.f32.xlu2 %v407_v45  ;;  %v649_v46 = vmul.f32 %v615_v17, %v1304_v11  ;;  %v647_v49 = vmul.f32 %v610_v10, %v1280_v2  ;;  %v650_v55 = vmul.f32 %v615_v17, %v1307_v12  ;;  %v648_v56 = vmul.f32 %v610_v10, %v1283_v3 }
  0xe0   : > { %423 = vadd.xlane.f32.xlu1 %v422_v52  ;;  %420 = vadd.xlane.f32.xlu0 %v419_v53 }
  0xe1   : > { %417 = vadd.xlane.f32.xlu2 %v416_v54  ;;  %v438_v54 = vld [vmem:[%s1668_s4 + $0x38] sm:$0xff] }
  0xe8   : > { %429 = vadd.xlane.f32.xlu0 %v428_v59  ;;  %v1471_v59 = vadd.f32 %v649_v46, %v647_v49 }
  0xe9   : > { %426 = vadd.xlane.f32.xlu2 %v425_v60 }
  0xf9   : > { %629 = vperm.xlu1 %990, %v603_v61  }
  0xfc   : > { %619 = vperm.xlu0 %992, %v601_v62  }
 0x101   : > { %624 = vperm.xlu2 %991, %v602_v63   ;;  %639 = vperm.xlu1 %990, %v605_v0  }
 0x109   : > { %634 = vperm.xlu2 %991, %v604_v1   ;;  %692 = vperm.xlu1 %990, %v689_v5  }
 0x111   : > { %644 = vperm.xlu2 %991, %v606_v9   ;;  %v1476_v9 = vadd.f32 %v650_v55, %v648_v56 }
 0x14b   : > { %v415_v25 = vpop.xlane.xlu1 %414  ;;  %v412_v26 = vpop.xlane.xlu0 %411 }
 0x14c   : > { %v441_v27 = vadd.f32 %v433_v18, %v415_v25  ;;  %v440_v28 = vadd.f32 %v432_v19, %v412_v26  ;;  %v409_v29 = vpop.xlane.xlu2 %408 }
 0x14d   : > { %v439_v30 = vadd.f32 %v431_v24, %v409_v29 }
 0x14e   : > { %v924_v31 = vmul.f32 -1.442695, %v441_v27  ;;  %v923_v32 = vmul.f32 -1.442695, %v440_v28 }
 0x14f   : > { %v922_v33 = vmul.f32 -1.442695, %v439_v30 }
 0x150   : > { %995 = vpow2.f32 %v924_v31 }
 0x151   : > { %997 = vpow2.f32 %v923_v32 }
 0x152   : > { %999 = vpow2.f32 %v922_v33 }
 0x153   : > { %v424_v37 = vpop.xlane.xlu1 %423  ;;  %v421_v38 = vpop.xlane.xlu0 %420 }
 0x154   : > { %v444_v39 = vadd.f32 %v436_v34, %v424_v37  ;;  %v443_v40 = vadd.f32 %v435_v35, %v421_v38  ;;  %v418_v41 = vpop.xlane.xlu2 %417 }
 0x155   : > { %v442_v42 = vadd.f32 %v434_v36, %v418_v41 }
 0x156   : > { %v996_v43 = vpop.eup %995  ;;  %v927_v44 = vmul.f32 -1.442695, %v444_v39  ;;  %v926_v51 = vmul.f32 -1.442695, %v443_v40 }
 0x157   : > { %v998_v45 = vpop.eup %997  ;;  %v1453_v47 = vadd.f32 1.0, %v996_v43  ;;  %v925_v53 = vmul.f32 -1.442695, %v442_v42 }
 0x158   : > { %v1000_v48 = vpop.eup %999  ;;  %v1456_v50 = vadd.f32 1.0, %v998_v45  ;;  %1001 = vpow2.f32 %v927_v44 }
 0x159   : > { %1003 = vrcp.f32 %v1453_v47  ;;  %v1459_v52 = vadd.f32 1.0, %v1000_v48  ;;  %v518_v62 = vand.u32 2147483647, %v1453_v47  ;;  %v520_v0 = vand.u32 2147483648, %v1453_v47 }
 0x15a   : > { %1005 = vrcp.f32 %v1456_v50  ;;  %v503_v1 = vand.u32 2147483647, %v1456_v50  ;;  %vm514_vm1 = vweird.f32 %v1453_v47  ;;  %v505_v17 = vand.u32 2147483648, %v1456_v50 }
 0x15b   : > { %1007 = vrcp.f32 %v1459_v52  ;;  %v430_v58 = vpop.xlane.xlu0 %429  ;;  %vm499_vm2 = vweird.f32 %v1456_v50  ;;  %v488_v25 = vand.u32 2147483647, %v1459_v52  ;;  %vm1485_vm3 = vcmp.eq.f32.partialorder %v518_v62, 8.507059e+37 }
 0x15c   : > { %1009 = vpow2.f32 %v926_v51  ;;  %v446_v60 = vadd.f32 %v438_v54, %v430_v58  ;;  %v427_v61 = vpop.xlane.xlu2 %426  ;;  %vm484_vm4 = vweird.f32 %v1459_v52  ;;  %v490_v29 = vand.u32 2147483648, %v1459_v52 }
 0x15d   : > { %1011 = vpow2.f32 %v925_v53  ;;  %v445_v63 = vadd.f32 %v437_v57, %v427_v61  ;;  %v521_v31 = vor.u32 1.1754944e-38, %v520_v0  ;;  %vm1493_vm5 = vcmp.eq.f32.partialorder %v503_v1, 8.507059e+37 }
 0x15e   : > { %v1002_v5 = vpop.eup %1001  ;;  %v929_v10 = vmul.f32 -1.442695, %v446_v60  ;;  %v506_v36 = vor.u32 1.1754944e-38, %v505_v17  ;;  %vm1500_vm7 = vcmp.eq.f32.partialorder %v488_v25, 8.507059e+37  ;;  %v491_v46 = vor.u32 1.1754944e-38, %v490_v29 }
 0x15f   : > { %v1004_v18 = vpop.eup %1003  ;;  %v1480_v19 = vadd.f32 1.0, %v1002_v5  ;;  %v928_v24 = vmul.f32 -1.442695, %v445_v63 }
 0x160   : > { %v1006_v26 = vpop.eup %1005  ;;  %1013 = vpow2.f32 %v929_v10  ;;  %v510_v27 = vmul.f32 %v1004_v18, %v1453_v47  ;;  %vm515_vm6 = vweird.f32 %v1004_v18 }
 0x161   : > { %v1008_v30 = vpop.eup %1007  ;;  %1015 = vrcp.f32 %v1480_v19  ;;  %v495_v32 = vmul.f32 %v1006_v26, %v1456_v50  ;;  %vm500_vm8 = vweird.f32 %v1006_v26  ;;  %vm559_vm10 = vweird.f32 %v1480_v19  ;;  %vm516_vm11 = vmor %vm514_vm1, %vm515_vm6 }
 0x162   : > { %v1010_v34 = vpop.eup %1009  ;;  %1017 = vpow2.f32 %v928_v24  ;;  %v511_v35 = vsub.f32 1.0, %v510_v27  ;;  %v480_v37 = vmul.f32 %v1008_v30, %v1459_v52  ;;  %vm485_vm9 = vweird.f32 %v1008_v30  ;;  %vm501_vm12 = vmor %vm499_vm2, %vm500_vm8 }
 0x163   : > { %v1012_v38 = vpop.eup %1011  ;;  %v1498_v39 = vadd.f32 1.0, %v1010_v34  ;;  %v496_v40 = vsub.f32 1.0, %v495_v32  ;;  %v563_v54 = vand.u32 2147483647, %v1480_v19  ;;  %v565_v60 = vand.u32 2147483648, %v1480_v19  ;;  %vm486_vm13 = vmor %vm484_vm4, %vm485_vm9 }
 0x164   : > { %v1504_v42 = vadd.f32 1.0, %v1012_v38  ;;  %v625_v43 = vpop.permute.xlu2 %624  ;;  %v512_v44 = vmul.f32 %v1004_v18, %v511_v35  ;;  %v481_v45 = vsub.f32 1.0, %v480_v37 }
 0x165   : > { %1019 = vrcp.f32 %v1498_v39  ;;  %v497_v48 = vmul.f32 %v1006_v26, %v496_v40  ;;  %v1513_v57 = vmul.f32 %v625_v43, %v1310_v13  ;;  %v654_v62 = vmul.f32 %v625_v43, %v1313_v14 }
 0x166   : > { %v1014_v49 = vpop.eup %1013  ;;  %1021 = vrcp.f32 %v1504_v42  ;;  %v513_v51 = vadd.f32 %v1004_v18, %v512_v44  ;;  %v482_v53 = vmul.f32 %v1008_v30, %v481_v45  ;;  %vm1534_vm14 = vcmp.eq.f32.partialorder %v563_v54, 8.507059e+37 }
 0x167   : > { %v1016_v55 = vpop.eup %1015  ;;  %v1510_v56 = vadd.f32 1.0, %v1014_v49  ;;  %v498_v58 = vadd.f32 %v1006_v26, %v497_v48  ;;  %v566_v28 = vor.u32 1.1754944e-38, %v565_v60  ;;  %vm544_vm0 = vweird.f32 %v1498_v39 }
 0x168   : > { %v1018_v61 = vpop.eup %1017  ;;  %v517_v63 = vsel %vm516_vm11, %v1004_v18, %v513_v51  ;;  %v483_v0 = vadd.f32 %v1008_v30, %v482_v53  ;;  %v555_v1 = vmul.f32 %v1016_v55, %v1480_v19  ;;  %vm560_vm15 = vweird.f32 %v1016_v55 }
 0x169   : > { %1023 = vrcp.f32 %v1510_v56  ;;  %v1525_v5 = vadd.f32 1.0, %v1018_v61  ;;  %v522_v47 = vsel %vm1485_vm3, %v521_v31, %v517_v63  ;;  %v502_v10 = vsel %vm501_vm12, %v1006_v26, %v498_v58  ;;  %vm561_vm2 = vmor %vm559_vm10, %vm560_vm15 }
 0x16a   : > { %748 = vperm.xlu1 %990, %v522_v47   ;;  %v507_v50 = vsel %vm1493_vm5, %v506_v36, %v502_v10  ;;  %v487_v17 = vsel %vm486_vm13, %v1008_v30, %v483_v0  ;;  %v556_v18 = vsub.f32 1.0, %v555_v1  ;;  %v548_v32 = vand.u32 2147483647, %v1498_v39 }
 0x16b   : > { %v1020_v25 = vpop.eup %1019  ;;  %743 = vperm.xlu2 %991, %v507_v50   ;;  %v492_v27 = vsel %vm1500_vm7, %v491_v46, %v487_v17  ;;  %v630_v26 = vpop.permute.xlu1 %629  ;;  %1025 = vrcp.f32 %v1525_v5  ;;  %v550_v35 = vand.u32 2147483648, %v1498_v39  ;;  %vm529_vm1 = vweird.f32 %v1504_v42 }
 0x16c   : > { %v1022_v52 = vpop.eup %1021  ;;  %738 = vperm.xlu0 %992, %v492_v27   ;;  %v635_v29 = vpop.permute.xlu2 %634  ;;  %v557_v30 = vmul.f32 %v1016_v55, %v556_v18  ;;  %v540_v31 = vmul.f32 %v1020_v25, %v1498_v39  ;;  %v655_v33 = vmul.f32 %v630_v26, %v1294_v7  ;;  %v656_v34 = vmul.f32 %v630_v26, %v1297_v8 }
 0x16d   : > { %v657_v36 = vmul.f32 %v635_v29, %v1316_v15  ;;  %v525_v41 = vmul.f32 %v1022_v52, %v1504_v42  ;;  %vm545_vm3 = vweird.f32 %v1020_v25  ;;  %v533_v46 = vand.u32 2147483647, %v1504_v42 }
 0x16e   : > { %v620_v37 = vpop.permute.xlu0 %619  ;;  %v558_v38 = vadd.f32 %v1016_v55, %v557_v30  ;;  %v541_v40 = vsub.f32 1.0, %v540_v31  ;;  %v535_v53 = vand.u32 2147483648, %v1504_v42  ;;  %v658_v54 = vmul.f32 %v635_v29, %v1319_v16  ;;  %vm546_vm5 = vmor %vm544_vm0, %vm545_vm3 }
 0x16f   : > { %v1550_v43 = vpop.eup %1023  ;;  %v651_v44 = vmul.f32 %v620_v37, %v1286_v4  ;;  %v652_v45 = vmul.f32 %v620_v37, %v1291_v6  ;;  %v526_v51 = vsub.f32 1.0, %v525_v41  ;;  %vm530_vm4 = vweird.f32 %v1022_v52 }
 0x170   : > { %v562_v48 = vsel %vm561_vm2, %v1016_v55, %v558_v38  ;;  %v542_v49 = vmul.f32 %v1020_v25, %v541_v40  ;;  %v585_v55 = vmul.f32 %v1550_v43, %v1510_v56  ;;  %vm549_vm6 = vcmp.eq.f32.partialorder %v548_v32, 8.507059e+37  ;;  %vm531_vm8 = vmor %vm529_vm1, %vm530_vm4 }
 0x171   : > { %v664_v58 = vadd.f32 %v1471_v59, %v651_v44  ;;  %v677_v60 = vadd.f32 %v1476_v9, %v652_v45  ;;  %v567_v61 = vsel %vm1534_vm14, %v566_v28, %v562_v48  ;;  %v1564_v63 = vpop.eup %1025  ;;  %v527_v0 = vmul.f32 %v1022_v52, %v526_v51 }
 0x172   : > { %763 = vperm.xlu1 %990, %v567_v61   ;;  %v543_v19 = vadd.f32 %v1020_v25, %v542_v49  ;;  %v551_v59 = vor.u32 1.1754944e-38, %v550_v35  ;;  %vm534_vm7 = vcmp.eq.f32.partialorder %v533_v46, 8.507059e+37  ;;  %v536_v17 = vor.u32 1.1754944e-38, %v535_v53 }
 0x173   : > { %v665_v1 = vadd.f32 %v664_v58, %v1513_v57  ;;  %v678_v47 = vadd.f32 %v677_v60, %v654_v62  ;;  %v640_v9 = vpop.permute.xlu1 %639  ;;  %v528_v50 = vadd.f32 %v1022_v52, %v527_v0  ;;  %v586_v28 = vsub.f32 1.0, %v585_v55 }
 0x174   : > { %v547_v10 = vsel %vm546_vm5, %v1020_v25, %v543_v19  ;;  %v659_v24 = vmul.f32 %v640_v9, %v1328_v20  ;;  %v660_v39 = vmul.f32 %v640_v9, %v1331_v21  ;;  %v645_v26 = vpop.permute.xlu2 %644  ;;  %v593_v29 = vand.u32 2147483647, %v1510_v56 }
 0x175   : > { %v552_v18 = vsel %vm549_vm6, %v551_v59, %v547_v10  ;;  %v666_v27 = vadd.f32 %v665_v1, %v655_v33  ;;  %v679_v57 = vadd.f32 %v678_v47, %v656_v34  ;;  %v532_v62 = vsel %vm531_vm8, %v1022_v52, %v528_v50 }
 0x176   : > { %758 = vperm.xlu2 %991, %v552_v18   ;;  %v537_v25 = vsel %vm534_vm7, %v536_v17, %v532_v62  ;;  %v595_v32 = vand.u32 2147483648, %v1510_v56  ;;  %v587_v42 = vmul.f32 %v1550_v43, %v586_v28  ;;  %vm590_vm9 = vweird.f32 %v1550_v43 }
 0x177   : > { %v667_v30 = vadd.f32 %v666_v27, %v657_v36  ;;  %v680_v31 = vadd.f32 %v679_v57, %v658_v54  ;;  %753 = vperm.xlu0 %992, %v537_v25   ;;  %v570_v33 = vmul.f32 %v1564_v63, %v1525_v5  ;;  %v661_v35 = vmul.f32 %v645_v26, %v1334_v22 }
 0x178   : > { %v662_v37 = vmul.f32 %v645_v26, %v1337_v23  ;;  %v588_v38 = vadd.f32 %v1550_v43, %v587_v42  ;;  %vm589_vm10 = vweird.f32 %v1510_v56  ;;  %vm594_vm11 = vcmp.eq.f32.partialorder %v593_v29, 8.507059e+37 }
 0x179   : > { %v668_v52 = vadd.f32 %v667_v30, %v659_v24  ;;  %v681_v34 = vadd.f32 %v680_v31, %v660_v39  ;;  %v571_v36 = vsub.f32 1.0, %v570_v33  ;;  %vm591_vm12 = vmor %vm589_vm10, %vm590_vm9  ;;  %v596_v44 = vor.u32 1.1754944e-38, %v595_v32 }
 0x17a   : > { %v580_v45 = vand.u32 2147483648, %v1525_v5  ;;  %v592_v46 = vsel %vm591_vm12, %v1550_v43, %v588_v38  ;;  %vm575_vm13 = vweird.f32 %v1564_v63  ;;  %v578_v49 = vand.u32 2147483647, %v1525_v5 }
 0x17b   : > { %v669_v40 = vadd.f32 %v668_v52, %v661_v35  ;;  %v682_v41 = vadd.f32 %v681_v34, %v662_v37  ;;  %v572_v48 = vmul.f32 %v1564_v63, %v571_v36  ;;  %v597_v54 = vsel %vm594_vm11, %v596_v44, %v592_v46  ;;  %v693_v10 = vpop.permute.xlu1 %692 }
 0x17c   : > { %vm574_vm14 = vweird.f32 %v1525_v5  ;;  %v581_v60 = vor.u32 1.1754944e-38, %v580_v45  ;;  %vm579_vm0 = vcmp.eq.f32.partialorder %v578_v49, 8.507059e+37  ;;  %v695_v18 = vperm.slane %v693_v10, 0 }
 0x17d   : > { %v670_v51 = vrot.slane %v669_v40, 4  ;;  %v683_v53 = vrot.slane %v682_v41, 4  ;;  %v573_v56 = vadd.f32 %v1564_v63, %v572_v48  ;;  %vm576_vm15 = vmor %vm574_vm14, %vm575_vm13 }
 0x17e   : > { %773 = vperm.xlu2 %991, %v597_v54  }
 0x17f   : > { %v671_v58 = vadd.f32 %v670_v51, %v669_v40  ;;  %v684_v61 = vadd.f32 %v683_v53, %v682_v41  ;;  %v577_v43 = vsel %vm576_vm15, %v1564_v63, %v573_v56 }
 0x180   : > { %v582_v19 = vsel %vm579_vm0, %v581_v60, %v577_v43 }
 0x181   : > { %768 = vperm.xlu0 %992, %v582_v19   ;;  %v672_v0 = vrot.slane %v671_v58, 2  ;;  %v685_v55 = vrot.slane %v684_v61, 2 }
 0x183   : > { %v673_v1 = vadd.f32 %v672_v0, %v671_v58  ;;  %v686_v47 = vadd.f32 %v685_v55, %v684_v61 }
 0x185   : > { %v674_v59 = vrot.slane %v673_v1, 1  ;;  %v687_v9 = vrot.slane %v686_v47, 1 }
 0x187   : > { %v675_v50 = vadd.f32 %v674_v59, %v673_v1  ;;  %v688_v17 = vadd.f32 %v687_v9, %v686_v47 }
 0x189   : > { %v696_v5 = vadd.f32 %v695_v18, %v675_v50  ;;  %v697_v24 = vadd.f32 %v695_v18, %v688_v17 }
 0x18b   : > { %v930_v27 = vmul.f32 -1.442695, %v696_v5  ;;  %v931_v57 = vmul.f32 -1.442695, %v697_v24 }
 0x18d   : > { %1027 = vpow2.f32 %v930_v27 }
 0x18e   : > { %1029 = vpow2.f32 %v931_v57 }
 0x193   : > { %v1028_v63 = vpop.eup %1027 }
 0x194   : > { %v1030_v62 = vpop.eup %1029  ;;  %v704_v39 = vadd.f32 1.0, %v1028_v63 }
 0x195   : > { %v705_v26 = vadd.f32 1.0, %v1030_v62 }
 0x196   : > { %1031 = vrcp.f32 %v704_v39  ;;  %vm711_vm3 = vweird.f32 %v704_v39  ;;  %v717_v35 = vand.u32 2147483648, %v704_v39  ;;  %v715_v38 = vand.u32 2147483647, %v704_v39 }
 0x197   : > { %1033 = vrcp.f32 %v705_v26  ;;  %v732_v37 = vand.u32 2147483648, %v705_v26  ;;  %vm726_vm5 = vweird.f32 %v705_v26  ;;  %v730_v36 = vand.u32 2147483647, %v705_v26 }
 0x198   : > { %v718_v44 = vor.u32 1.1754944e-38, %v717_v35  ;;  %vm716_vm7 = vcmp.eq.f32.partialorder %v715_v38, 8.507059e+37 }
 0x199   : > { %v733_v45 = vor.u32 1.1754944e-38, %v732_v37  ;;  %vm731_vm8 = vcmp.eq.f32.partialorder %v730_v36, 8.507059e+37 }
 0x19c   : > { %v1032_v28 = vpop.eup %1031 }
 0x19d   : > { %v1034_v29 = vpop.eup %1033  ;;  %v707_v25 = vmul.f32 %v1032_v28, %v704_v39  ;;  %vm712_vm1 = vweird.f32 %v1032_v28 }
 0x19e   : > { %v722_v30 = vmul.f32 %v1034_v29, %v705_v26  ;;  %vm727_vm2 = vweird.f32 %v1034_v29  ;;  %vm713_vm4 = vmor %vm711_vm3, %vm712_vm1 }
 0x19f   : > { %v708_v31 = vsub.f32 1.0, %v707_v25  ;;  %vm728_vm6 = vmor %vm726_vm5, %vm727_vm2 }
 0x1a0   : > { %v723_v32 = vsub.f32 1.0, %v722_v30 }
 0x1a1   : > { %v709_v42 = vmul.f32 %v1032_v28, %v708_v31 }
 0x1a2   : > { %v724_v33 = vmul.f32 %v1034_v29, %v723_v32 }
 0x1a3   : > { %v710_v52 = vadd.f32 %v1032_v28, %v709_v42 }
 0x1a4   : > { %v725_v34 = vadd.f32 %v1034_v29, %v724_v33 }
 0x1a5   : > { %v714_v40 = vsel %vm713_vm4, %v1032_v28, %v710_v52 }
 0x1a6   : > { %v729_v41 = vsel %vm728_vm6, %v1034_v29, %v725_v34  ;;  %v719_v46 = vsel %vm716_vm7, %v718_v44, %v714_v40 }
 0x1a7   : > { %v734_v48 = vsel %vm731_vm8, %v733_v45, %v729_v41 }
 0x1c5   : > { %v744_v49 = vpop.permute.xlu2 %743 }
 0x1c6   : > { %v778_v51 = vadd.f32 %v744_v49, %v719_v46  ;;  %v779_v53 = vadd.f32 %v744_v49, %v734_v48 }
 0x1c8   : > { %v794_v54 = vmul.f32 %v778_v51, %v1304_v11  ;;  %v795_v56 = vmul.f32 %v779_v53, %v1307_v12 }
 0x1ca   : > { %810 = vst [vmem:[%s1598_s22 + $0x10] sm:$0xff] %v794_v54 }
 0x1cb   : > { %811 = vst [vmem:[%s1598_s22 + $0x18] sm:$0xff] %v795_v56 }
 0x1d0   : > { %v759_v58 = vpop.permute.xlu2 %758 }
 0x1d1   : > { %v784_v60 = vadd.f32 %v759_v58, %v719_v46  ;;  %v785_v61 = vadd.f32 %v759_v58, %v734_v48 }
 0x1d3   : > { %v800_v43 = vmul.f32 %v784_v60, %v1294_v7  ;;  %v801_v11 = vmul.f32 %v785_v61, %v1297_v8 }
 0x1d5   : > { %816 = vst [vmem:[%s1598_s22 + $0x40] sm:$0xff] %v800_v43 }
 0x1d6   : > { %817 = vst [vmem:[%s1598_s22 + $0x48] sm:$0xff] %v801_v11 }
 0x1d8   : > { %v774_v12 = vpop.permute.xlu2 %773 }
 0x1d9   : > { %v790_v19 = vadd.f32 %v774_v12, %v719_v46  ;;  %v791_v0 = vadd.f32 %v774_v12, %v734_v48 }
 0x1db   : > { %v806_v55 = vmul.f32 %v790_v19, %v1334_v22  ;;  %v807_v1 = vmul.f32 %v791_v0, %v1337_v23 }
 0x1dc   : > { %v749_v47 = vpop.permute.xlu1 %748 }
 0x1dd   : > { %822 = vst [vmem:[%s1598_s22 + $0x70] sm:$0xff] %v806_v55  ;;  %v780_v59 = vadd.f32 %v749_v47, %v719_v46  ;;  %v781_v9 = vadd.f32 %v749_v47, %v734_v48 }
 0x1de   : > { %823 = vst [vmem:[%s1598_s22 + $0x78] sm:$0xff] %v807_v1  ;;  %v739_v7 = vpop.permute.xlu0 %738 }
 0x1df   : > { %v796_v8 = vmul.f32 %v780_v59, %v1286_v4  ;;  %v797_v10 = vmul.f32 %v781_v9, %v1291_v6  ;;  %v776_v50 = vadd.f32 %v739_v7, %v719_v46  ;;  %v777_v17 = vadd.f32 %v739_v7, %v734_v48 }
 0x1e1   : > { %812 = vst [vmem:[%s1598_s22 + $0x20] sm:$0xff] %v796_v8  ;;  %v792_v22 = vmul.f32 %v776_v50, %v1280_v2  ;;  %v793_v23 = vmul.f32 %v777_v17, %v1283_v3 }
 0x1e2   : > { %813 = vst [vmem:[%s1598_s22 + $0x28] sm:$0xff] %v797_v10 }
 0x1e3   : > { %808 = vst [vmem:[%s1598_s22] sm:$0xff] %v792_v22 }
 0x1e4   : > { %809 = vst [vmem:[%s1598_s22 + $0x8] sm:$0xff] %v793_v23  ;;  %v764_v18 = vpop.permute.xlu1 %763 }
 0x1e5   : > { %v786_v5 = vadd.f32 %v764_v18, %v719_v46  ;;  %v787_v4 = vadd.f32 %v764_v18, %v734_v48 }
 0x1e7   : > { %v802_v24 = vmul.f32 %v786_v5, %v1316_v15  ;;  %v803_v6 = vmul.f32 %v787_v4, %v1319_v16 }
 0x1e9   : > { %818 = vst [vmem:[%s1598_s22 + $0x50] sm:$0xff] %v802_v24  ;;  %v754_v27 = vpop.permute.xlu0 %753 }
 0x1ea   : > { %819 = vst [vmem:[%s1598_s22 + $0x58] sm:$0xff] %v803_v6  ;;  %v782_v2 = vadd.f32 %v754_v27, %v719_v46  ;;  %v783_v57 = vadd.f32 %v754_v27, %v734_v48 }
 0x1ec   : > { %v798_v3 = vmul.f32 %v782_v2, %v1310_v13  ;;  %v799_v63 = vmul.f32 %v783_v57, %v1313_v14 }
 0x1ee   : > { %814 = vst [vmem:[%s1598_s22 + $0x30] sm:$0xff] %v798_v3 }
 0x1ef   : > { %815 = vst [vmem:[%s1598_s22 + $0x38] sm:$0xff] %v799_v63 }
 0x1f3   : > { %v769_v15 = vpop.permute.xlu0 %768 }
 0x1f4   : > { %v788_v16 = vadd.f32 %v769_v15, %v719_v46  ;;  %v789_v62 = vadd.f32 %v769_v15, %v734_v48 }
 0x1f6   : > { %v804_v39 = vmul.f32 %v788_v16, %v1328_v20  ;;  %v805_v13 = vmul.f32 %v789_v62, %v1331_v21 }
 0x1f8   : > { %820 = vst [vmem:[%s1598_s22 + $0x60] sm:$0xff] %v804_v39 }
 0x1f9   : > { %821 = vst [vmem:[%s1598_s22 + $0x68] sm:$0xff] %v805_v13 }
 0x1fa   : > { %1092 = shalt.err (!%p1089_p4)
}
 0x1fb   : > { %s1136_s23 = smov 256   ;;  %s1137_s22 = smov 16  }
 0x1fc   : > { %941 = dma.vmem_to_hbm [thread:$0]  (%p1231_p11), %s838_s18, 2048, %s840_s12, %s825_s6, %s1136_s23, %s1136_s23, %s1137_s22  }
 0x1fd PF: > { %s854_s9 = sand.u32 1, %s1119_s26   ;;  %p1685_p7 = scmp.ge.s32.totalorder %s1131_s29, 2 }
 0x1fe   : > { %s855_s24 = scalar_lea.sflag [#allocation5], %s854_s9 }
 0x1ff   : > { %p948_p5 = pnand %p1685_p7, %p1235_p12 }
 0x201   : > { %p949_p8 = pneg %p948_p5 }
 0x203   : > { %1114 = dma.done.wait (%p949_p8), %s855_s24, 2048  }
 0x204   : > { %1116 = vsyncadd (%p949_p8), %s855_s24, 4294965248  ;;  %p22_p10 = scmp.ge.s32.totalorder %s1206_s8, 4   ;;  %s1686_s26 = smov %s1123_s27 }
 0x205   : > { %s1687_s27 = smov %s1127_s28  ;;  %s1688_s28 = smov %s1218_s11 }
 0x206   : > { %s1689_s29 = smov %s1206_s8  ;;  %24 = sbr.rel (!%p22_p10) target bundleno = 8 (0x8), region = 93 }
 0x20b   :  { %861 = vsyncpa [#allocation4], 1 }
 0x20c   :  { %863 = vsyncpa [#allocation4 + $0x1], 1 }
 0x20d   :  { %864 = vsyncpa [#allocation5], 1 }
 0x20e   :  { %866 = vsyncpa [#allocation5 + $0x1], 1 }

</bundles_post_ra>
